<compile_context>
chip_gen: v7x
topology: tpu7x:2x2x1
jax: 0.10.0
libtpu: 0.0.40
codegen_flags: <defaults>
</compile_context>

<pallas_src>
import jax
import jax.numpy as jnp
from jax.experimental import pallas as pl
from jax.experimental.pallas import tpu as pltpu


def _round_up(x: int, m: int) -> int:
    return ((x + m - 1) // m) * m


def _vmem_budgets():
    """(block budget, vmem_limit_bytes) derived from the chip's VMEM size."""
    try:
        cap = pltpu.get_tpu_info().vmem_capacity_bytes
    except Exception:                      # no HW query available: assume 64 MiB (v7x)
        cap = 64 * 1024 * 1024
    block_budget = min(int(cap * 0.25), 40 * 1024 * 1024)   # ~16 MiB v7x / ~32 MiB v5e,v6e
    vmem_limit = min(int(cap * 0.75), 100 * 1024 * 1024)    # ~48 MiB v7x / ~96 MiB v5e,v6e
    return block_budget, vmem_limit


# ----------------------------- MXU path (wide channels) -----------------------------

def _specmix_mxu_kernel(a_ref, w_ref, o_ref):
    # a: (1, Mt, Bp, Kp) bf16   w: (1, Mt, Kp, Np) bf16   o: (1, Mt, Bp, Np) f32
    # Mode-batched matmul on the MXU; bf16 operands, f32 accumulation.
    o_ref[0] = jax.lax.dot_general(
        a_ref[0], w_ref[0],
        dimension_numbers=(((2,), (1,)), ((0,), (0,))),
        preferred_element_type=jnp.float32,
    )


def _choose_mxu_mode_tile(M: int, Bp: int, Kp: int, Np: int, budget_bytes: int) -> int:
    # bf16 A + bf16 W + f32 O bytes per mode; x2 for double-buffering.
    per_mode = 2 * Bp * Kp + 2 * Kp * Np + 4 * Bp * Np
    mt = budget_bytes // (2 * per_mode)
    mt = max(8, min(int(mt), 512))
    # Keep >= ~8 grid steps along the mode axis so the pipeline has a steady state.
    cap = max(8, _round_up((M + 7) // 8, 8))
    mt = min(mt, cap)
    return max(8, (mt // 8) * 8)


def _specmix_mxu(A, Wp, Mt, vmem_limit):
    R, Mp, Bp, Kp = A.shape
    Np = Wp.shape[-1]
    grid = (R, Mp // Mt)
    # NOTE: if a profile shows exposed weight DMA, pipeline_mode=pl.Buffered(3)
    # on the weight spec is the next lever (costs one extra Kp*Np VMEM block).
    return pl.pallas_call(
        _specmix_mxu_kernel,
        out_shape=jax.ShapeDtypeStruct((R, Mp, Bp, Np), jnp.float32),
        grid_spec=pltpu.PrefetchScalarGridSpec(
            num_scalar_prefetch=0,
            grid=grid,
            in_specs=[pl.BlockSpec((1, Mt, Bp, Kp), lambda r, m: (r, m, 0, 0)),
                      pl.BlockSpec((1, Mt, Kp, Np), lambda r, m: (r, m, 0, 0))],
            out_specs=pl.BlockSpec((1, Mt, Bp, Np), lambda r, m: (r, m, 0, 0)),
        ),
        compiler_params=pltpu.CompilerParams(
            dimension_semantics=("parallel", "parallel"),
            vmem_limit_bytes=vmem_limit,
        ),
    )(A, Wp)


# ----------------------------- VPU path (tiny channels) -----------------------------

def _specmix_vpu_kernel(a_ref, w_ref, o_ref):
    # a: (1, B, K, Mt) f32   w: (1, K, N, Mt) f32   o: (1, B, N, Mt) f32
    # K = 2*Cin, N = 2*Cout are tiny; modes sit dense on the lane axis, so the
    # channel reduction is an unrolled VPU FMA chain over real (not padded) bytes.
    a = a_ref[0]
    w = w_ref[0]
    B, K, Mt = a.shape
    N = w.shape[1]
    acc = jnp.zeros((B, N, Mt), jnp.float32)
    for i in range(K):                                   # K is small (< 128) on this path
        acc = acc + a[:, i, :][:, None, :] * w[i][None, :, :]
    o_ref[0] = acc


def _specmix_vpu(A, Wp, Mtv, vmem_limit):
    R, B, K, Mp = A.shape
    N = Wp.shape[2]
    grid = (R, Mp // Mtv)
    return pl.pallas_call(
        _specmix_vpu_kernel,
        out_shape=jax.ShapeDtypeStruct((R, B, N, Mp), jnp.float32),
        grid_spec=pltpu.PrefetchScalarGridSpec(
            num_scalar_prefetch=0,
            grid=grid,
            in_specs=[pl.BlockSpec((1, B, K, Mtv), lambda r, m: (r, 0, 0, m)),
                      pl.BlockSpec((1, K, N, Mtv), lambda r, m: (r, 0, 0, m))],
            out_specs=pl.BlockSpec((1, B, N, Mtv), lambda r, m: (r, 0, 0, m)),
        ),
        compiler_params=pltpu.CompilerParams(
            dimension_semantics=("parallel", "parallel"),
            vmem_limit_bytes=vmem_limit,
        ),
    )(A, Wp)


# ----------------------------- weight packing (init time) -----------------------------

def _pack_block_weights(w1_re, w1_im, w2_re, w2_im):
    """Real 2x2 block form of the complex mix: (2 regions, 2Cin, 2Cout, M) f32."""
    Cin, Cout, m1, m2 = w1_re.shape
    M = m1 * m2
    wr = jnp.stack([w1_re, w2_re]).reshape(2, Cin, Cout, M).astype(jnp.float32)
    wi = jnp.stack([w1_im, w2_im]).reshape(2, Cin, Cout, M).astype(jnp.float32)
    top = jnp.concatenate([wr, wi], axis=2)              # (2, Cin, 2Cout, M)
    bot = jnp.concatenate([-wi, wr], axis=2)             # (2, Cin, 2Cout, M)
    return jnp.concatenate([top, bot], axis=1)           # (2, 2Cin, 2Cout, M)


def make_spectral_conv2d(w1_re, w1_im, w2_re, w2_im, modes1, modes2, batch_size):
    """Build a SpectralConv2d forward.  Weight packing is done ONCE here and cached."""
    Cin, Cout = w1_re.shape[0], w1_re.shape[1]
    M = modes1 * modes2
    Wblock = _pack_block_weights(w1_re, w1_im, w2_re, w2_im)   # (2, 2Cin, 2Cout, M)

    block_budget, vmem_limit = _vmem_budgets()
    use_mxu = (2 * Cin >= 128) and (2 * Cout >= 128)

    if use_mxu:
        Kp = _round_up(2 * Cin, 128)
        Np = _round_up(2 * Cout, 128)
        Bp_hint = _round_up(max(batch_size, 1), 16)            # bf16 sublane multiple
        Mt = _choose_mxu_mode_tile(M, Bp_hint, Kp, Np, block_budget)
        Mp = _round_up(M, Mt)
        Wmxu = jnp.transpose(Wblock, (0, 3, 1, 2))             # (2, M, 2Cin, 2Cout)
        Wmxu = jnp.pad(Wmxu, ((0, 0), (0, Mp - M),
                              (0, Kp - 2 * Cin), (0, Np - 2 * Cout)))
        Wmxu = jax.block_until_ready(Wmxu.astype(jnp.bfloat16))  # cached, bf16
    else:
        Mtv = min(_round_up(M, 128), 512)
        Mpv = _round_up(M, Mtv)
        Wvpu = jnp.pad(Wblock, ((0, 0), (0, 0), (0, 0), (0, Mpv - M)))
        Wvpu = jax.block_until_ready(Wvpu)                      # cached, f32, no channel pad

    def forward(x):
        B, Ci, H, W = x.shape
        assert Ci == Cin
        Wr = W // 2 + 1

        # TODO(synk): rfft2 / irfft2 have no Pallas primitive; done in plain JAX.
        x_ft = jnp.fft.rfft2(x)                                 # (B, Cin, H, Wr) c64
        a1 = x_ft[:, :, :modes1, :modes2]
        a2 = x_ft[:, :, H - modes1:, :modes2]
        a = jnp.stack([a1, a2]).reshape(2, B, Cin, M)           # complex64

        if use_mxu:
            # Activations built directly in kernel layout: (2, M, B, 2Cin) bf16.
            ac = jnp.transpose(a, (0, 3, 1, 2))                 # (2, M, B, Cin) c64
            A = jnp.concatenate([jnp.real(ac), jnp.imag(ac)], axis=-1)
            A = A.astype(jnp.bfloat16)
            Bp = _round_up(B, 16)
            A = jnp.pad(A, ((0, 0), (0, Mp - M), (0, Bp - B), (0, Kp - 2 * Cin)))
            O = _specmix_mxu(A, Wmxu, Mt, vmem_limit)           # (2, Mp, Bp, Np) f32
            O = O[:, :M, :B, :]
            o = O[..., :Cout] + 1j * O[..., Cout:2 * Cout]      # (2, M, B, Cout)
            o = jnp.transpose(o, (0, 2, 3, 1))                  # (2, B, Cout, M)
        else:
            # Lane-dense VPU path: modes on lanes, tiny channel dims left unpadded.
            A = jnp.concatenate([jnp.real(a), jnp.imag(a)], axis=2)   # (2, B, 2Cin, M)
            A = jnp.pad(A.astype(jnp.float32),
                        ((0, 0), (0, 0), (0, 0), (0, Mpv - M)))
            O = _specmix_vpu(A, Wvpu, Mtv, vmem_limit)          # (2, B, 2Cout, Mpv) f32
            O = O[..., :M]
            o = O[:, :, :Cout, :] + 1j * O[:, :, Cout:, :]      # (2, B, Cout, M)

        o = o.reshape(2, B, Cout, modes1, modes2).astype(jnp.complex64)
        out_ft = jnp.zeros((B, Cout, H, Wr), dtype=jnp.complex64)
        out_ft = out_ft.at[:, :, :modes1, :modes2].set(o[0])
        out_ft = out_ft.at[:, :, H - modes1:, :modes2].set(o[1])
        return jnp.fft.irfft2(out_ft, s=(H, W))

    return jax.jit(forward)


# ----------------------------- pure-JAX reference -----------------------------

def _reference(x, w1_re, w1_im, w2_re, w2_im, modes1, modes2):
    B, Cin, H, W = x.shape
    Cout = w1_re.shape[1]
    Wr = W // 2 + 1
    x_ft = jnp.fft.rfft2(x)
    w1 = (w1_re + 1j * w1_im).astype(jnp.complex64)
    w2 = (w2_re + 1j * w2_im).astype(jnp.complex64)
    out_ft = jnp.zeros((B, Cout, H, Wr), dtype=jnp.complex64)
    out_ft = out_ft.at[:, :, :modes1, :modes2].set(
        jnp.einsum('bixy,ioxy->boxy', x_ft[:, :, :modes1, :modes2], w1))
    out_ft = out_ft.at[:, :, H - modes1:, :modes2].set(
        jnp.einsum('bixy,ioxy->boxy', x_ft[:, :, H - modes1:, :modes2], w2))
    return jnp.fft.irfft2(out_ft, s=(H, W))


if __name__ == "__main__":
    key = jax.random.PRNGKey(0)
    k_x1, k_w1, k_x2, k_w2 = jax.random.split(key, 4)

    def make_weights(k, Cin, Cout, m1, m2):
        ks = jax.random.split(k, 4)
        scale = 1.0 / (Cin * Cout)
        shp = (Cin, Cout, m1, m2)
        # torch.rand(..., dtype=cfloat): real & imag parts uniform in [0, 1)
        return tuple(scale * jax.random.uniform(ki, shp, jnp.float32) for ki in ks)

    # --- Config 1: module-default tiny channels -> VPU path (f32, unpadded channels) ---
    B, Cin, Cout, H, W, m1, m2 = 2, 4, 4, 16, 16, 4, 4
    w1r, w1i, w2r, w2i = make_weights(k_w1, Cin, Cout, m1, m2)
    x = jax.random.normal(k_x1, (B, Cin, H, W), jnp.float32)
    fwd = make_spectral_conv2d(w1r, w1i, w2r, w2i, m1, m2, batch_size=B)
    out = jax.block_until_ready(fwd(x))
    ref = _reference(x, w1r, w1i, w2r, w2i, m1, m2)
    assert out.shape == (B, Cout, H, W)
    assert jnp.max(jnp.abs(out - ref)) < 2e-4, "VPU-path mismatch vs reference"

    # --- Config 2: wide channels -> bf16 MXU path ---
    B2, Cin2, Cout2, H2, W2, m1b, m2b = 2, 64, 64, 32, 32, 8, 8
    w1r2, w1i2, w2r2, w2i2 = make_weights(k_w2, Cin2, Cout2, m1b, m2b)
    x2 = jax.random.normal(k_x2, (B2, Cin2, H2, W2), jnp.float32)
    fwd2 = make_spectral_conv2d(w1r2, w1i2, w2r2, w2i2, m1b, m2b, batch_size=B2)
    out2 = jax.block_until_ready(fwd2(x2))
    ref2 = _reference(x2, w1r2, w1i2, w2r2, w2i2, m1b, m2b)
    assert out2.shape == (B2, Cout2, H2, W2)
    rel = jnp.max(jnp.abs(out2 - ref2)) / (jnp.max(jnp.abs(ref2)) + 1e-12)
    assert rel < 2e-2, f"MXU-path mismatch vs reference (rel={rel})"

    print("KERNEL_OK")
</pallas_src>

<mosaic_0001>
module attributes {stable_mosaic.version = 11 : i64} {
  func.func @_specmix_vpu_kernel(%arg0: i32, %arg1: i32, %arg2: memref<1x2x8x128xf32, #tpu.memory_space<vmem>>, %arg3: memref<1x8x8x128xf32, #tpu.memory_space<vmem>>, %arg4: memref<1x2x8x128xf32, #tpu.memory_space<vmem>>) attributes {dimension_semantics = [#tpu.dimension_semantics<parallel>, #tpu.dimension_semantics<parallel>], iteration_bounds = array<i64: 2, 1>, scalar_prefetch = 0 : i64, scratch_operands = 0 : i64, tpu.core_type = #tpu.core_type<tc>, window_params = [{transform_indices = @transform_0, window_bounds = array<i64: 1, 2, 8, 128>}, {transform_indices = @transform_1, window_bounds = array<i64: 1, 8, 8, 128>}, {transform_indices = @transform_2, window_bounds = array<i64: 1, 2, 8, 128>}]} {
    %c0 = arith.constant 0 : index
    %c0_0 = arith.constant 0 : index
    %c0_1 = arith.constant 0 : index
    %c0_2 = arith.constant 0 : index
    %0 = vector.load %arg2[%c0, %c0_0, %c0_1, %c0_2] : memref<1x2x8x128xf32, #tpu.memory_space<vmem>>, vector<1x2x8x128xf32>
    %1 = vector.shape_cast %0 : vector<1x2x8x128xf32> to vector<2x8x128xf32>
    %c0_3 = arith.constant 0 : index
    %c0_4 = arith.constant 0 : index
    %c0_5 = arith.constant 0 : index
    %c0_6 = arith.constant 0 : index
    %2 = vector.load %arg3[%c0_3, %c0_4, %c0_5, %c0_6] : memref<1x8x8x128xf32, #tpu.memory_space<vmem>>, vector<1x8x8x128xf32>
    %3 = vector.shape_cast %2 : vector<1x8x8x128xf32> to vector<8x8x128xf32>
    %cst = arith.constant 0.000000e+00 : f32
    %4 = vector.broadcast %cst : f32 to vector<2x8x128xf32>
    %5 = vector.extract_strided_slice %1 {offsets = [0, 0, 0], sizes = [2, 1, 128], strides = [1, 1, 1]} : vector<2x8x128xf32> to vector<2x1x128xf32>
    %6 = vector.shape_cast %5 : vector<2x1x128xf32> to vector<2x128xf32>
    %7 = vector.shape_cast %6 : vector<2x128xf32> to vector<2x1x128xf32>
    %8 = vector.extract_strided_slice %3 {offsets = [0, 0, 0], sizes = [1, 8, 128], strides = [1, 1, 1]} : vector<8x8x128xf32> to vector<1x8x128xf32>
    %9 = vector.shape_cast %8 : vector<1x8x128xf32> to vector<8x128xf32>
    %10 = vector.shape_cast %9 : vector<8x128xf32> to vector<1x8x128xf32>
    %11 = vector.broadcast %7 : vector<2x1x128xf32> to vector<2x8x128xf32>
    %12 = vector.broadcast %10 : vector<1x8x128xf32> to vector<2x8x128xf32>
    %13 = arith.mulf %11, %12 : vector<2x8x128xf32>
    %14 = arith.addf %4, %13 : vector<2x8x128xf32>
    %15 = vector.extract_strided_slice %1 {offsets = [0, 1, 0], sizes = [2, 1, 128], strides = [1, 1, 1]} : vector<2x8x128xf32> to vector<2x1x128xf32>
    %16 = vector.shape_cast %15 : vector<2x1x128xf32> to vector<2x128xf32>
    %17 = vector.shape_cast %16 : vector<2x128xf32> to vector<2x1x128xf32>
    %18 = vector.extract_strided_slice %3 {offsets = [1, 0, 0], sizes = [1, 8, 128], strides = [1, 1, 1]} : vector<8x8x128xf32> to vector<1x8x128xf32>
    %19 = vector.shape_cast %18 : vector<1x8x128xf32> to vector<8x128xf32>
    %20 = vector.shape_cast %19 : vector<8x128xf32> to vector<1x8x128xf32>
    %21 = vector.broadcast %17 : vector<2x1x128xf32> to vector<2x8x128xf32>
    %22 = vector.broadcast %20 : vector<1x8x128xf32> to vector<2x8x128xf32>
    %23 = arith.mulf %21, %22 : vector<2x8x128xf32>
    %24 = arith.addf %14, %23 : vector<2x8x128xf32>
    %25 = vector.extract_strided_slice %1 {offsets = [0, 2, 0], sizes = [2, 1, 128], strides = [1, 1, 1]} : vector<2x8x128xf32> to vector<2x1x128xf32>
    %26 = vector.shape_cast %25 : vector<2x1x128xf32> to vector<2x128xf32>
    %27 = vector.shape_cast %26 : vector<2x128xf32> to vector<2x1x128xf32>
    %28 = vector.extract_strided_slice %3 {offsets = [2, 0, 0], sizes = [1, 8, 128], strides = [1, 1, 1]} : vector<8x8x128xf32> to vector<1x8x128xf32>
    %29 = vector.shape_cast %28 : vector<1x8x128xf32> to vector<8x128xf32>
    %30 = vector.shape_cast %29 : vector<8x128xf32> to vector<1x8x128xf32>
    %31 = vector.broadcast %27 : vector<2x1x128xf32> to vector<2x8x128xf32>
    %32 = vector.broadcast %30 : vector<1x8x128xf32> to vector<2x8x128xf32>
    %33 = arith.mulf %31, %32 : vector<2x8x128xf32>
    %34 = arith.addf %24, %33 : vector<2x8x128xf32>
    %35 = vector.extract_strided_slice %1 {offsets = [0, 3, 0], sizes = [2, 1, 128], strides = [1, 1, 1]} : vector<2x8x128xf32> to vector<2x1x128xf32>
    %36 = vector.shape_cast %35 : vector<2x1x128xf32> to vector<2x128xf32>
    %37 = vector.shape_cast %36 : vector<2x128xf32> to vector<2x1x128xf32>
    %38 = vector.extract_strided_slice %3 {offsets = [3, 0, 0], sizes = [1, 8, 128], strides = [1, 1, 1]} : vector<8x8x128xf32> to vector<1x8x128xf32>
    %39 = vector.shape_cast %38 : vector<1x8x128xf32> to vector<8x128xf32>
    %40 = vector.shape_cast %39 : vector<8x128xf32> to vector<1x8x128xf32>
    %41 = vector.broadcast %37 : vector<2x1x128xf32> to vector<2x8x128xf32>
    %42 = vector.broadcast %40 : vector<1x8x128xf32> to vector<2x8x128xf32>
    %43 = arith.mulf %41, %42 : vector<2x8x128xf32>
    %44 = arith.addf %34, %43 : vector<2x8x128xf32>
    %45 = vector.extract_strided_slice %1 {offsets = [0, 4, 0], sizes = [2, 1, 128], strides = [1, 1, 1]} : vector<2x8x128xf32> to vector<2x1x128xf32>
    %46 = vector.shape_cast %45 : vector<2x1x128xf32> to vector<2x128xf32>
    %47 = vector.shape_cast %46 : vector<2x128xf32> to vector<2x1x128xf32>
    %48 = vector.extract_strided_slice %3 {offsets = [4, 0, 0], sizes = [1, 8, 128], strides = [1, 1, 1]} : vector<8x8x128xf32> to vector<1x8x128xf32>
    %49 = vector.shape_cast %48 : vector<1x8x128xf32> to vector<8x128xf32>
    %50 = vector.shape_cast %49 : vector<8x128xf32> to vector<1x8x128xf32>
    %51 = vector.broadcast %47 : vector<2x1x128xf32> to vector<2x8x128xf32>
    %52 = vector.broadcast %50 : vector<1x8x128xf32> to vector<2x8x128xf32>
    %53 = arith.mulf %51, %52 : vector<2x8x128xf32>
    %54 = arith.addf %44, %53 : vector<2x8x128xf32>
    %55 = vector.extract_strided_slice %1 {offsets = [0, 5, 0], sizes = [2, 1, 128], strides = [1, 1, 1]} : vector<2x8x128xf32> to vector<2x1x128xf32>
    %56 = vector.shape_cast %55 : vector<2x1x128xf32> to vector<2x128xf32>
    %57 = vector.shape_cast %56 : vector<2x128xf32> to vector<2x1x128xf32>
    %58 = vector.extract_strided_slice %3 {offsets = [5, 0, 0], sizes = [1, 8, 128], strides = [1, 1, 1]} : vector<8x8x128xf32> to vector<1x8x128xf32>
    %59 = vector.shape_cast %58 : vector<1x8x128xf32> to vector<8x128xf32>
    %60 = vector.shape_cast %59 : vector<8x128xf32> to vector<1x8x128xf32>
    %61 = vector.broadcast %57 : vector<2x1x128xf32> to vector<2x8x128xf32>
    %62 = vector.broadcast %60 : vector<1x8x128xf32> to vector<2x8x128xf32>
    %63 = arith.mulf %61, %62 : vector<2x8x128xf32>
    %64 = arith.addf %54, %63 : vector<2x8x128xf32>
    %65 = vector.extract_strided_slice %1 {offsets = [0, 6, 0], sizes = [2, 1, 128], strides = [1, 1, 1]} : vector<2x8x128xf32> to vector<2x1x128xf32>
    %66 = vector.shape_cast %65 : vector<2x1x128xf32> to vector<2x128xf32>
    %67 = vector.shape_cast %66 : vector<2x128xf32> to vector<2x1x128xf32>
    %68 = vector.extract_strided_slice %3 {offsets = [6, 0, 0], sizes = [1, 8, 128], strides = [1, 1, 1]} : vector<8x8x128xf32> to vector<1x8x128xf32>
    %69 = vector.shape_cast %68 : vector<1x8x128xf32> to vector<8x128xf32>
    %70 = vector.shape_cast %69 : vector<8x128xf32> to vector<1x8x128xf32>
    %71 = vector.broadcast %67 : vector<2x1x128xf32> to vector<2x8x128xf32>
    %72 = vector.broadcast %70 : vector<1x8x128xf32> to vector<2x8x128xf32>
    %73 = arith.mulf %71, %72 : vector<2x8x128xf32>
    %74 = arith.addf %64, %73 : vector<2x8x128xf32>
    %75 = vector.extract_strided_slice %1 {offsets = [0, 7, 0], sizes = [2, 1, 128], strides = [1, 1, 1]} : vector<2x8x128xf32> to vector<2x1x128xf32>
    %76 = vector.shape_cast %75 : vector<2x1x128xf32> to vector<2x128xf32>
    %77 = vector.shape_cast %76 : vector<2x128xf32> to vector<2x1x128xf32>
    %78 = vector.extract_strided_slice %3 {offsets = [7, 0, 0], sizes = [1, 8, 128], strides = [1, 1, 1]} : vector<8x8x128xf32> to vector<1x8x128xf32>
    %79 = vector.shape_cast %78 : vector<1x8x128xf32> to vector<8x128xf32>
    %80 = vector.shape_cast %79 : vector<8x128xf32> to vector<1x8x128xf32>
    %81 = vector.broadcast %77 : vector<2x1x128xf32> to vector<2x8x128xf32>
    %82 = vector.broadcast %80 : vector<1x8x128xf32> to vector<2x8x128xf32>
    %83 = arith.mulf %81, %82 : vector<2x8x128xf32>
    %84 = arith.addf %74, %83 : vector<2x8x128xf32>
    %c0_7 = arith.constant 0 : index
    %c0_8 = arith.constant 0 : index
    %c0_9 = arith.constant 0 : index
    %c0_10 = arith.constant 0 : index
    %85 = vector.load %arg4[%c0_7, %c0_8, %c0_9, %c0_10] : memref<1x2x8x128xf32, #tpu.memory_space<vmem>>, vector<1x2x8x128xf32>
    %86 = vector.shape_cast %85 : vector<1x2x8x128xf32> to vector<2x8x128xf32>
    %87 = vector.shape_cast %84 : vector<2x8x128xf32> to vector<1x2x8x128xf32>
    tpu.vector_store %arg4[%c0_7, %c0_8, %c0_9, %c0_10], %87 {strides = array<i32>} : memref<1x2x8x128xf32, #tpu.memory_space<vmem>>, vector<1x2x8x128xf32>,
    return
  }
  func.func @transform_0(%arg0: i32, %arg1: i32) -> (i32, i32, i32, i32) {
    %c0_i32 = arith.constant 0 : i32
    %c0_i32_0 = arith.constant 0 : i32
    %c0_i32_1 = arith.constant 0 : i32
    return %arg0, %c0_i32, %c0_i32_0, %arg1 : i32, i32, i32, i32
  }
  func.func @transform_1(%arg0: i32, %arg1: i32) -> (i32, i32, i32, i32) {
    %c0_i32 = arith.constant 0 : i32
    %c0_i32_0 = arith.constant 0 : i32
    %c0_i32_1 = arith.constant 0 : i32
    return %arg0, %c0_i32, %c0_i32_0, %arg1 : i32, i32, i32, i32
  }
  func.func @transform_2(%arg0: i32, %arg1: i32) -> (i32, i32, i32, i32) {
    %c0_i32 = arith.constant 0 : i32
    %c0_i32_0 = arith.constant 0 : i32
    %c0_i32_1 = arith.constant 0 : i32
    return %arg0, %c0_i32, %c0_i32_0, %arg1 : i32, i32, i32, i32
  }
}

</mosaic_0001>

<bundles_post_ra>
// kernel: forward.1
= control target key start
LH: loop header
LB: loop body
LE: loop exit
PB: predicated region body
PF: predicated region fallthrough
CT: control target
= control target key end

     0   :  { %s494_s9 = smov 0   ;;  %s496_s10 = smov 0   ;;  %s548_s0 = inlined_call_operand.vmem [shape: f32[2,2,8,128], index: 0, kind: input, shape index: {}]   ;;  %s549_s1 = inlined_call_operand.vmem [shape: f32[2,8,8,128], index: 1, kind: input, shape index: {}]   ;;  %s550_s2 = inlined_call_operand.vmem [shape: f32[2,2,8,128], index: 2, kind: output, shape index: {}]  }
   0x1   :  { %s498_s11 = smov 0  }
   0x2 LB: > { %s24_s12 = sadd.s32 1, %s473_s10  ;;  %p419_p0 = scmp.ge.s32.totalorder %s477_s11, 1  ;;  %s477_s11 = sphi %s498_s11, %s12_s11   ;;  %s473_s10 = sphi %s496_s10, %s552_s10   ;;  %s469_s9 = sphi %s494_s9, %s551_s9  }
   0x3   : > { %p26_p1 = scmp.ge.s32.totalorder %s24_s12, 2  ;;  %p146_p2 = scmp.lt.s32.totalorder %s477_s11, 3 }
   0x5   : > { %s554_s12 = smov (%p26_p1, %s24_s12), 0  ;;  %p147_p3 = pnand %p419_p0, %p146_p2 }
   0x6   : > { %p182_p4 = scmp.lt.s32.totalorder (!%p147_p3), %s469_s9, 1  ;;  %v216_v0 = vlaneseq (!%p147_p3) }
   0x7   : > { %150 = sbr.rel (%p147_p3) target bundleno = 39 (0x27), region = 28 }
   0x8   : > { %v217_v1 = vshrl.u32 (!%p147_p3), %v216_v0, 7 }
   0xa   : > { %v218_v2 = vsub.s32 (!%p147_p3), 0, %v217_v1  ;;  %v230_v3 = vsub.s32 (!%p147_p3), 1, %v217_v1  ;;  %v242_v4 = vsub.s32 (!%p147_p3), 2, %v217_v1  ;;  %v254_v5 = vsub.s32 (!%p147_p3), 3, %v217_v1 }
   0xb   : > { %v266_v6 = vsub.s32 (!%p147_p3), 4, %v217_v1  ;;  %v278_v9 = vsub.s32 (!%p147_p3), 5, %v217_v1  ;;  %v290_v19 = vsub.s32 (!%p147_p3), 6, %v217_v1  ;;  %v302_v26 = vsub.s32 (!%p147_p3), 7, %v217_v1 }
   0xe   : > { %s556_s9 = smov (!%p182_p4, %s469_s9), 1 }
   0xf   : > { %s428_s13 = sshll.u32 %s556_s9, 4  ;;  %s429_s14 = sshll.u32 %s556_s9, 6 }
  0x10   : > { %s189_s17 = scalar_lea.vmem %s548_s0, %s428_s13  ;;  %s524_s20 = scalar_lea.vmem %s549_s1, %s429_s14 }
  0x11   : > { %v206_v7 = vld [vmem:[%s189_s17] sm:$0xff]  ;;  %v209_v10 = vld [vmem:[%s524_s20 + $0x8] sm:$0xff]  ;;  %v210_v11 = vld [vmem:[%s524_s20 + $0x10] sm:$0xff]  ;;  %s205_s23 = scalar_lea.vmem %s550_s2, %s428_s13 }
  0x12   : > { %v208_v8 = vld [vmem:[%s524_s20] sm:$0xff]  ;;  %v211_v12 = vld [vmem:[%s524_s20 + $0x18] sm:$0xff]  ;;  %v219_v13 = vrot.slane %v206_v7, %v218_v2  ;;  %v231_v14 = vrot.slane %v206_v7, %v230_v3  ;;  %v243_v15 = vrot.slane %v206_v7, %v242_v4  ;;  %v255_v16 = vrot.slane %v206_v7, %v254_v5  ;;  %v207_v17 = vld [vmem:[%s189_s17 + $0x8] sm:$0xff] }
  0x13   : > { %v267_v18 = vrot.slane %v206_v7, %v266_v6  ;;  %v212_v20 = vld [vmem:[%s524_s20 + $0x20] sm:$0xff]  ;;  %v279_v25 = vrot.slane %v206_v7, %v278_v9  ;;  %v213_v27 = vld [vmem:[%s524_s20 + $0x28] sm:$0xff]  ;;  %v223_v29 = vrot.slane %v207_v17, %v218_v2  ;;  %v235_v30 = vrot.slane %v207_v17, %v230_v3  ;;  %v214_v36 = vld [vmem:[%s524_s20 + $0x30] sm:$0xff] }
  0x14   : > { %v224_v21 = vmul.f32 %v219_v13, %v208_v8  ;;  %v236_v22 = vmul.f32 %v231_v14, %v209_v10  ;;  %v248_v23 = vmul.f32 %v243_v15, %v210_v11  ;;  %v260_v24 = vmul.f32 %v255_v16, %v211_v12  ;;  %v215_v43 = vld [vmem:[%s524_s20 + $0x38] sm:$0xff] }
  0x15   : > { %v247_v31 = vrot.slane %v207_v17, %v242_v4  ;;  %v272_v32 = vmul.f32 %v267_v18, %v212_v20  ;;  %v291_v33 = vrot.slane %v206_v7, %v290_v19  ;;  %v259_v34 = vrot.slane %v207_v17, %v254_v5 }
  0x16   : > { %v238_v28 = vadd.f32 %v236_v22, %v224_v21  ;;  %v271_v35 = vrot.slane %v207_v17, %v266_v6  ;;  %v225_v38 = vmul.f32 %v223_v29, %v208_v8  ;;  %v237_v39 = vmul.f32 %v235_v30, %v209_v10 }
  0x17   : > { %v249_v40 = vmul.f32 %v247_v31, %v210_v11  ;;  %v284_v41 = vmul.f32 %v279_v25, %v213_v27  ;;  %v303_v42 = vrot.slane %v206_v7, %v302_v26  ;;  %v261_v46 = vmul.f32 %v259_v34, %v211_v12 }
  0x18   : > { %v250_v37 = vadd.f32 %v248_v23, %v238_v28  ;;  %v239_v45 = vadd.f32 %v237_v39, %v225_v38  ;;  %v283_v47 = vrot.slane %v207_v17, %v278_v9  ;;  %v296_v48 = vmul.f32 %v291_v33, %v214_v36 }
  0x19   : > { %v273_v51 = vmul.f32 %v271_v35, %v212_v20  ;;  %v295_v52 = vrot.slane %v207_v17, %v290_v19  ;;  %v308_v53 = vmul.f32 %v303_v42, %v215_v43  ;;  %v307_v57 = vrot.slane %v207_v17, %v302_v26 }
  0x1a   : > { %v262_v44 = vadd.f32 %v260_v24, %v250_v37  ;;  %v251_v50 = vadd.f32 %v249_v40, %v239_v45  ;;  %v285_v56 = vmul.f32 %v283_v47, %v213_v27 }
  0x1b   : > { %v297_v60 = vmul.f32 %v295_v52, %v214_v36  ;;  %v309_v63 = vmul.f32 %v307_v57, %v215_v43 }
  0x1c   : > { %v274_v49 = vadd.f32 %v272_v32, %v262_v44  ;;  %v263_v55 = vadd.f32 %v261_v46, %v251_v50 }
  0x1e   : > { %v286_v54 = vadd.f32 %v284_v41, %v274_v49  ;;  %v275_v59 = vadd.f32 %v273_v51, %v263_v55 }
  0x20   : > { %v298_v58 = vadd.f32 %v296_v48, %v286_v54  ;;  %v287_v62 = vadd.f32 %v285_v56, %v275_v59 }
  0x22   : > { %v310_v61 = vadd.f32 %v308_v53, %v298_v58  ;;  %v299_v0 = vadd.f32 %v297_v60, %v287_v62 }
  0x24   : > { %312 = vst [vmem:[%s205_s23] sm:$0xff] %v310_v61  ;;  %v311_v1 = vadd.f32 %v309_v63, %v299_v0 }
  0x26   : > { %313 = vst [vmem:[%s205_s23 + $0x8] sm:$0xff] %v311_v1 }
  0x27 PF: > { %s12_s11 = sadd.s32 1, %s477_s11   ;;  %s551_s9 = smov %s473_s10 }
  0x28   : > { %p9_p5 = scmp.ge.s32.totalorder %s12_s11, 4   ;;  %s552_s10 = smov %s554_s12 }
  0x2a   :  { %11 = sbr.rel (!%p9_p5) target bundleno = 2 (0x2), region = 61 }

// kernel: reverse.1
= control target key start
LH: loop header
LB: loop body
LE: loop exit
PB: predicated region body
PF: predicated region fallthrough
CT: control target
= control target key end

     0   :  { %v71_v3 = vlaneseq  ;;  %v64_v9 = vld [vmem:[#allocation0 + $0x7] ss:$-1 sm:$0xff]  ;;  %v78_v12 = vld [vmem:[#allocation0 + $0x17] ss:$-1 sm:$0xff]  ;;  %s329_s0 = inlined_call_operand.vmem [shape: f32[2,4,16,7], index: 0, kind: input, shape index: {}]   ;;  %s330_s1 = inlined_call_operand.vmem [shape: f32[2,4,16,7], index: 1, kind: output, shape index: {}]  }
   0x1   :  { %v44_v0 = vld [vmem:[%s329_s0] sm:$0xff]  ;;  %v46_v1 = vld [vmem:[%s329_s0 + $0x8] sm:$0xff]  ;;  %v48_v2 = vld [vmem:[%s329_s0 + $0x10] sm:$0xff]  ;;  %v65_v10 = vrot.slane %v64_v9, 1  ;;  %v79_v14 = vrot.slane %v78_v12, 1 }
   0x2   :  { %45 = vst [vmem:[#allocation0 + $0x8] sm:$0xff] %v44_v0  ;;  %47 = vst [vmem:[#allocation0 + $0x18] sm:$0xff] %v46_v1  ;;  %v50_v4 = vld [vmem:[%s329_s0 + $0x18] sm:$0xff]  ;;  %v52_v5 = vld [vmem:[%s329_s0 + $0x20] sm:$0xff]  ;;  %v72_v11 = vshrl.u32 %v71_v3, 7 }
   0x3   :  { %49 = vst [vmem:[#allocation0 + $0x28] sm:$0xff] %v48_v2  ;;  %v54_v6 = vld [vmem:[%s329_s0 + $0x28] sm:$0xff]  ;;  %51 = vst [vmem:[#allocation0 + $0x38] sm:$0xff] %v50_v4  ;;  %v56_v7 = vld [vmem:[%s329_s0 + $0x30] sm:$0xff] }
   0x4   :  { %53 = vst [vmem:[#allocation0 + $0x48] sm:$0xff] %v52_v5  ;;  %55 = vst [vmem:[#allocation0 + $0x58] sm:$0xff] %v54_v6  ;;  %v58_v8 = vld [vmem:[%s329_s0 + $0x38] sm:$0xff]  ;;  %v92_v13 = vld [vmem:[#allocation0 + $0x27] ss:$-1 sm:$0xff]  ;;  %vm73_vm0 = vcmp.lt.s32.totalorder %v72_v11, 7 }
   0x5   :  { %57 = vst [vmem:[#allocation0 + $0x68] sm:$0xff] %v56_v7  ;;  %59 = vst [vmem:[#allocation0 + $0x78] sm:$0xff] %v58_v8  ;;  %v93_v15 = vrot.slane %v92_v13, 1  ;;  %v106_v16 = vld [vmem:[#allocation0 + $0x37] ss:$-1 sm:$0xff] }
   0x6   :  { %66 = vst [vmem:[#allocation1] sm:$0xff] %v65_v10  ;;  %v107_v17 = vrot.slane %v106_v16, 1  ;;  %v120_v18 = vld [vmem:[#allocation0 + $0x47] ss:$-1 sm:$0xff]  ;;  %v134_v19 = vld [vmem:[#allocation0 + $0x57] ss:$-1 sm:$0xff] }
   0x7   :  { %80 = vst [vmem:[#allocation1 + $0x8] sm:$0xff] %v79_v14  ;;  %94 = vst [vmem:[#allocation1 + $0x10] sm:$0xff] %v93_v15  ;;  %v121_v20 = vrot.slane %v120_v18, 1  ;;  %v135_v21 = vrot.slane %v134_v19, 1  ;;  %v148_v22 = vld [vmem:[#allocation0 + $0x67] ss:$-1 sm:$0xff] }
   0x8   :  { %v162_v23 = vld [vmem:[#allocation0 + $0x77] ss:$-1 sm:$0xff]  ;;  %108 = vst [vmem:[#allocation1 + $0x18] sm:$0xff] %v107_v17  ;;  %v149_v24 = vrot.slane %v148_v22, 1 }
   0x9   :  { %v163_v25 = vrot.slane %v162_v23, 1  ;;  %v69_v26 = vld [vmem:[#allocation0 + $0xf] ss:$-1 sm:$0xff]  ;;  %v83_v27 = vld [vmem:[#allocation0 + $0x1f] ss:$-1 sm:$0xff]  ;;  %122 = vst [vmem:[#allocation1 + $0x20] sm:$0xff] %v121_v20 }
   0xa   :  { %v97_v28 = vld [vmem:[#allocation0 + $0x2f] ss:$-1 sm:$0xff]  ;;  %136 = vst [vmem:[#allocation1 + $0x28] sm:$0xff] %v135_v21  ;;  %v70_v29 = vrot.slane %v69_v26, 1  ;;  %v84_v30 = vrot.slane %v83_v27, 1  ;;  %150 = vst [vmem:[#allocation1 + $0x30] sm:$0xff] %v149_v24 }
   0xb   :  { %v98_v31 = vrot.slane %v97_v28, 1  ;;  %v111_v32 = vld [vmem:[#allocation0 + $0x3f] ss:$-1 sm:$0xff]  ;;  %164 = vst [vmem:[#allocation1 + $0x38] sm:$0xff] %v163_v25  ;;  %v125_v34 = vld [vmem:[#allocation0 + $0x4f] ss:$-1 sm:$0xff] }
   0xc   :  { %v112_v33 = vrot.slane %v111_v32, 1  ;;  %v139_v35 = vld [vmem:[#allocation0 + $0x5f] ss:$-1 sm:$0xff]  ;;  %74 = vst.msk [vmem:[#allocation1] sm:$0xff] %vm73_vm0, %v70_v29  ;;  %88 = vst.msk [vmem:[#allocation1 + $0x8] sm:$0xff] %vm73_vm0, %v84_v30  ;;  %v126_v36 = vrot.slane %v125_v34, 1 }
   0xd   :  { %102 = vst.msk [vmem:[#allocation1 + $0x10] sm:$0xff] %vm73_vm0, %v98_v31  ;;  %v140_v37 = vrot.slane %v139_v35, 1  ;;  %v153_v38 = vld [vmem:[#allocation0 + $0x6f] ss:$-1 sm:$0xff]  ;;  %v167_v39 = vld [vmem:[#allocation0 + $0x7f] ss:$-1 sm:$0xff] }
   0xe   :  { %116 = vst.msk [vmem:[#allocation1 + $0x18] sm:$0xff] %vm73_vm0, %v112_v33  ;;  %v154_v40 = vrot.slane %v153_v38, 1  ;;  %v168_v41 = vrot.slane %v167_v39, 1  ;;  %130 = vst.msk [vmem:[#allocation1 + $0x20] sm:$0xff] %vm73_vm0, %v126_v36 }
   0xf   :  { %144 = vst.msk [vmem:[#allocation1 + $0x28] sm:$0xff] %vm73_vm0, %v140_v37 }
  0x10   :  { %158 = vst.msk [vmem:[#allocation1 + $0x30] sm:$0xff] %vm73_vm0, %v154_v40  ;;  %172 = vst.msk [vmem:[#allocation1 + $0x38] sm:$0xff] %vm73_vm0, %v168_v41 }
  0x13   :  { %v214_v42 = vld [vmem:[#allocation1] sm:$0xff]  ;;  %v216_v43 = vld [vmem:[#allocation1 + $0x8] sm:$0xff] }
  0x14   :  { %v218_v44 = vld [vmem:[#allocation1 + $0x10] sm:$0xff]  ;;  %215 = vst [vmem:[%s330_s1] sm:$0xff] %v214_v42  ;;  %217 = vst [vmem:[%s330_s1 + $0x8] sm:$0xff] %v216_v43 }
  0x15   :  { %219 = vst [vmem:[%s330_s1 + $0x10] sm:$0xff] %v218_v44  ;;  %v220_v45 = vld [vmem:[#allocation1 + $0x18] sm:$0xff]  ;;  %v222_v46 = vld [vmem:[#allocation1 + $0x20] sm:$0xff] }
  0x16   :  { %221 = vst [vmem:[%s330_s1 + $0x18] sm:$0xff] %v220_v45  ;;  %v224_v47 = vld [vmem:[#allocation1 + $0x28] sm:$0xff]  ;;  %223 = vst [vmem:[%s330_s1 + $0x20] sm:$0xff] %v222_v46 }
  0x17   :  { %225 = vst [vmem:[%s330_s1 + $0x28] sm:$0xff] %v224_v47  ;;  %v226_v48 = vld [vmem:[#allocation1 + $0x30] sm:$0xff]  ;;  %v228_v49 = vld [vmem:[#allocation1 + $0x38] sm:$0xff] }
  0x18   :  { %227 = vst [vmem:[%s330_s1 + $0x30] sm:$0xff] %v226_v48  ;;  %229 = vst [vmem:[%s330_s1 + $0x38] sm:$0xff] %v228_v49 }

</bundles_post_ra>
